<compile_context>
chip_gen: v5e
topology: v5e:2x2
jax: 0.10.0
libtpu: 0.0.40
codegen_flags: <defaults>
</compile_context>

<pallas_src>
import functools

import jax
import jax.numpy as jnp
from jax.experimental import pallas as pl
from jax.experimental.pallas import tpu as pltpu


def _round_up(x, m):
    return ((x + m - 1) // m) * m


@functools.lru_cache(maxsize=1)
def _vmem_budget_bytes():
    """Per-generation VMEM budget: ~48 MiB on 64-MiB chips (v7x), ~96 MiB on 128-MiB chips."""
    try:
        cap = int(pltpu.get_tpu_info().vmem_capacity_bytes)
    except Exception:
        cap = 64 * 1024 * 1024  # conservative fallback -> 48 MiB budget, safe on all gens
    return int(min(96 * 1024 * 1024, (cap * 3) // 4))


def highway_kernel(x_ref, w_ref, b_ref, o_ref):
    """One tile of rows.

    x_ref: (TM, EP)   input tile, native dtype, E zero-padded to EP (multiple of 128)
    w_ref: (EP, 2EP)  fused, zero-padded [W_proj^T | W_gate^T]
    b_ref: (1, 2EP)   fused, zero-padded [b_proj   | b_gate]
    o_ref: (TM, EP)   output tile (lane-dense: last dim is a multiple of 128)
    """
    ep = x_ref.shape[-1]
    x = x_ref[...]                                        # native dtype straight into the MXU

    # One fused matmul: (TM, EP) @ (EP, 2EP) -> (TM, 2EP), accumulated in f32.
    pg = jnp.dot(x, w_ref[...], preferred_element_type=jnp.float32) + b_ref[...]

    # EP is a multiple of 128, so these slices are vreg(128-lane)-aligned: no masked relayout.
    proj = jnp.maximum(pg[:, :ep], 0.0)                   # relu(x @ Wp + bp)
    gate = jax.nn.sigmoid(pg[:, ep:])                     # sigmoid(x @ Wg + bg)

    x_f32 = x.astype(jnp.float32)
    # gate*proj + (1-gate)*x  ==  gate*(proj - x) + x   (one fewer VPU multiply)
    o_ref[...] = (gate * (proj - x_f32) + x_f32).astype(o_ref.dtype)


@functools.partial(jax.jit, static_argnames=("tile_m",))
def highway(conv_out, w_fused_t, b_fused, *, tile_m=1024):
    """conv_out: (N, E); w_fused_t: (EP, 2*EP) padded fused weights; b_fused: (1, 2*EP)."""
    n, e = conv_out.shape
    ep = _round_up(e, 128)
    assert w_fused_t.shape == (ep, 2 * ep), "pack params with fuse_highway_params()"
    assert b_fused.shape == (1, 2 * ep)

    # --- lane-dense E padding (zero columns; W contraction rows / bias already zero) ---
    x = conv_out if ep == e else jnp.pad(conv_out, ((0, 0), (0, ep - e)))

    # --- static (trace-time) tile sizing against a generation-aware VMEM budget -------
    in_isz = jnp.dtype(conv_out.dtype).itemsize
    w_isz = jnp.dtype(w_fused_t.dtype).itemsize
    sublane = max(8, 32 // in_isz)                        # 8 f32, 16 bf16, 32 int8/fp8

    budget = _vmem_budget_bytes()

    w_full_bytes = (ep * 2 * ep + 2 * ep) * w_isz
    single_buf_w = w_full_bytes > (4 << 20)               # grid-invariant: 2nd buffer is waste
    w_bytes = (1 if single_buf_w else 2) * w_full_bytes

    # Per-row VMEM: x tile + out tile (double-buffered, native dtype) plus the f32
    # intermediates (pg is 2*EP wide; proj/gate/x_f32/result add ~4*EP more).
    row_bytes = 2 * ep * in_isz + 2 * ep * in_isz + 6 * ep * 4

    headroom = 2 << 20
    tm = min(tile_m, max(sublane, (budget - w_bytes - headroom) // row_bytes))
    # Keep >= 2 grid steps so ("parallel",) can shard rows across v7x's 2 TensorCores,
    # and never make the block larger than the (sublane-rounded) data.
    if n > sublane:
        tm = min(tm, _round_up(pl.cdiv(n, 2), sublane))
    tm = max(sublane, (min(tm, _round_up(n, sublane)) // sublane) * sublane)

    grid = (pl.cdiv(n, tm),)          # partial last block masked by Pallas (no pad / slice)

    # Explicit VMEM limit: correct accounting (no 2x double-count), capped at the budget.
    vmem_need = w_bytes + tm * row_bytes + headroom
    vmem_limit = int(min(budget, max(vmem_need, 16 << 20)))

    w_kw = dict(pipeline_mode=pl.Buffered(1)) if single_buf_w else {}
    in_specs = [
        # TODO(synk): sweep pipeline_mode=pl.Buffered(3) on x/out specs if DMA latency
        # shows up between grid steps (per-tile compute is tiny).
        pl.BlockSpec((tm, ep), lambda i: (i, 0)),          # x tile
        pl.BlockSpec((ep, 2 * ep), lambda i: (0, 0), **w_kw),   # fused weights (grid-invariant)
        pl.BlockSpec((1, 2 * ep), lambda i: (0, 0), **w_kw),    # fused bias (grid-invariant)
    ]

    out = pl.pallas_call(
        highway_kernel,
        out_shape=jax.ShapeDtypeStruct((n, ep), conv_out.dtype),
        grid_spec=pltpu.PrefetchScalarGridSpec(
            num_scalar_prefetch=0,
            grid=grid,
            in_specs=in_specs,
            out_specs=pl.BlockSpec((tm, ep), lambda i: (i, 0)),
        ),
        compiler_params=pltpu.CompilerParams(
            dimension_semantics=("parallel",),             # rows shard across v7x's 2 TCs
            vmem_limit_bytes=vmem_limit,
        ),
    )(x, w_fused_t, b_fused)

    return out if ep == e else out[:, :e]


def init_highway_params(key, e_word, dtype=jnp.float32):
    """nn.Linear-style init: W is (out, in), b is (out,), U(-1/sqrt(E), 1/sqrt(E))."""
    bound = 1.0 / float(e_word) ** 0.5
    k1, k2, k3, k4 = jax.random.split(key, 4)
    w_proj = jax.random.uniform(k1, (e_word, e_word), dtype, -bound, bound)
    b_proj = jax.random.uniform(k2, (e_word,), dtype, -bound, bound)
    w_gate = jax.random.uniform(k3, (e_word, e_word), dtype, -bound, bound)
    b_gate = jax.random.uniform(k4, (e_word,), dtype, -bound, bound)
    return w_proj, b_proj, w_gate, b_gate


def fuse_highway_params(w_proj, b_proj, w_gate, b_gate, dtype=None):
    """Pack and zero-pad params to the lane-dense layout the kernel expects.

    Returns w_fused_t: (EP, 2*EP) with W_proj^T in [:E, :E] and W_gate^T in [:E, EP:EP+E],
    zeros elsewhere (so padded K rows / output columns contribute nothing), and
    b_fused: (1, 2*EP) with the matching column layout.  EP = round_up(E, 128).
    NOTE: pass dtype=jnp.bfloat16 (and feed bf16 activations) once E grows into the
    MXU-bound regime; f32 accumulation is kept via preferred_element_type.
    """
    e = w_proj.shape[0]
    ep = _round_up(e, 128)
    dt = dtype if dtype is not None else w_proj.dtype

    def pad_wt(w):  # nn.Linear (out, in) -> zero-padded (EP, EP) holding W^T
        return jnp.zeros((ep, ep), dt).at[:e, :e].set(w.T.astype(dt))

    def pad_b(b):
        return jnp.zeros((ep,), dt).at[:e].set(b.astype(dt))

    w_fused_t = jnp.concatenate([pad_wt(w_proj), pad_wt(w_gate)], axis=1)  # (EP, 2EP)
    b_fused = jnp.concatenate([pad_b(b_proj), pad_b(b_gate)])[None, :]     # (1, 2EP)
    return w_fused_t, b_fused


def highway_reference(x, w_proj, b_proj, w_gate, b_gate):
    proj = jnp.maximum(x @ w_proj.T + b_proj, 0.0)
    gate = jax.nn.sigmoid(x @ w_gate.T + b_gate)
    return gate * proj + (1.0 - gate) * x


if __name__ == "__main__":
    e_word = 32
    batch, sent_len = 4, 15            # N = 60 rows: exercises the partial-last-block path
    n = batch * sent_len

    key = jax.random.PRNGKey(0)
    k_x, k_p = jax.random.split(key)
    x = jax.random.normal(k_x, (n, e_word), jnp.float32)

    w_proj, b_proj, w_gate, b_gate = init_highway_params(k_p, e_word)
    w_fused_t, b_fused = fuse_highway_params(w_proj, b_proj, w_gate, b_gate)

    out = highway(x, w_fused_t, b_fused)
    out = jax.block_until_ready(out)

    ref = highway_reference(x, w_proj, b_proj, w_gate, b_gate)
    assert out.shape == (n, e_word)
    assert jnp.allclose(out, ref, atol=1e-5, rtol=1e-5), float(jnp.max(jnp.abs(out - ref)))

    print("KERNEL_OK")
</pallas_src>

<mosaic_0001>
module attributes {stable_mosaic.version = 11 : i64} {
  func.func @highway_kernel(%arg0: i32, %arg1: memref<32x128xf32, #tpu.memory_space<vmem>>, %arg2: memref<128x256xf32, #tpu.memory_space<vmem>>, %arg3: memref<1x256xf32, #tpu.memory_space<vmem>>, %arg4: memref<32x128xf32, #tpu.memory_space<vmem>>) attributes {dimension_semantics = [#tpu.dimension_semantics<parallel>], iteration_bounds = array<i64: 2>, scalar_prefetch = 0 : i64, scratch_operands = 0 : i64, tpu.core_type = #tpu.core_type<tc>, window_params = [{transform_indices = @transform_0, window_bounds = array<i64: 32, 128>}, {pipeline_mode = #tpu.pipeline_mode<synchronous>, transform_indices = @transform_1, window_bounds = array<i64: 128, 256>}, {pipeline_mode = #tpu.pipeline_mode<synchronous>, transform_indices = @transform_2, window_bounds = array<i64: 1, 256>}, {transform_indices = @transform_3, window_bounds = array<i64: 32, 128>}]} {
    %c0 = arith.constant 0 : index
    %c0_0 = arith.constant 0 : index
    %0 = vector.load %arg1[%c0, %c0_0] : memref<32x128xf32, #tpu.memory_space<vmem>>, vector<32x128xf32>
    %c0_1 = arith.constant 0 : index
    %c0_2 = arith.constant 0 : index
    %1 = vector.load %arg2[%c0_1, %c0_2] : memref<128x256xf32, #tpu.memory_space<vmem>>, vector<128x256xf32>
    %cst = arith.constant dense<0.000000e+00> : vector<32x256xf32>
    %2 = tpu.matmul %0, %1, %cst {dimension_numbers = #tpu.dot_dimension_numbers<[1], [0], [0], [1], [0, 0, 1, 1], [], []>} : vector<32x128xf32>, vector<128x256xf32>, vector<32x256xf32> -> vector<32x256xf32>
    %c0_3 = arith.constant 0 : index
    %c0_4 = arith.constant 0 : index
    %3 = vector.load %arg3[%c0_3, %c0_4] : memref<1x256xf32, #tpu.memory_space<vmem>>, vector<1x256xf32>
    %4 = vector.broadcast %3 : vector<1x256xf32> to vector<32x256xf32>
    %5 = arith.addf %2, %4 : vector<32x256xf32>
    %6 = vector.extract_strided_slice %5 {offsets = [0, 0], sizes = [32, 128], strides = [1, 1]} : vector<32x256xf32> to vector<32x128xf32>
    %cst_5 = arith.constant 0.000000e+00 : f32
    %7 = vector.broadcast %cst_5 : f32 to vector<32x128xf32>
    %8 = arith.maximumf %6, %7 : vector<32x128xf32>
    %9 = vector.extract_strided_slice %5 {offsets = [0, 128], sizes = [32, 128], strides = [1, 1]} : vector<32x256xf32> to vector<32x128xf32>
    %10 = arith.negf %9 : vector<32x128xf32>
    %11 = math.exp %10 : vector<32x128xf32>
    %cst_6 = arith.constant 1.000000e+00 : f32
    %12 = vector.broadcast %cst_6 : f32 to vector<32x128xf32>
    %13 = arith.addf %12, %11 : vector<32x128xf32>
    %14 = arith.divf %12, %13 : vector<32x128xf32>
    %15 = arith.subf %8, %0 : vector<32x128xf32>
    %16 = arith.mulf %14, %15 : vector<32x128xf32>
    %17 = arith.addf %16, %0 : vector<32x128xf32>
    %c0_7 = arith.constant 0 : index
    %c0_8 = arith.constant 0 : index
    %18 = vector.load %arg4[%c0_7, %c0_8] : memref<32x128xf32, #tpu.memory_space<vmem>>, vector<32x128xf32>
    tpu.vector_store %arg4[%c0_7, %c0_8], %17 {strides = array<i32>} : memref<32x128xf32, #tpu.memory_space<vmem>>, vector<32x128xf32>,
    return
  }
  func.func @transform_0(%arg0: i32) -> (i32, i32) {
    %c0_i32 = arith.constant 0 : i32
    %c0_i32_0 = arith.constant 0 : i32
    return %arg0, %c0_i32 : i32, i32
  }
  func.func @transform_1(%arg0: i32) -> (i32, i32) {
    %c0_i32 = arith.constant 0 : i32
    %c0_i32_0 = arith.constant 0 : i32
    %c0_i32_1 = arith.constant 0 : i32
    return %c0_i32, %c0_i32_0 : i32, i32
  }
  func.func @transform_2(%arg0: i32) -> (i32, i32) {
    %c0_i32 = arith.constant 0 : i32
    %c0_i32_0 = arith.constant 0 : i32
    %c0_i32_1 = arith.constant 0 : i32
    return %c0_i32, %c0_i32_0 : i32, i32
  }
  func.func @transform_3(%arg0: i32) -> (i32, i32) {
    %c0_i32 = arith.constant 0 : i32
    %c0_i32_0 = arith.constant 0 : i32
    return %arg0, %c0_i32 : i32, i32
  }
}

</mosaic_0001>

<bundles_post_ra>
// kernel: highway.1
= control target key start
LH: loop header
LB: loop body
LE: loop exit
PB: predicated region body
PF: predicated region fallthrough
CT: control target
= control target key end

     0   :  { %8 = vsyncpa [#allocation3], 0  ;;  %s606_s12 = smov 0   ;;  %s684_s0 = inlined_call_operand.vmem [shape: f32[60,128], index: 0, kind: input, shape index: {}]   ;;  %s685_s1 = inlined_call_operand.hbm [shape: f32[128,256], index: 1, kind: input, shape index: {}]   ;;  %s686_s2 = inlined_call_operand.vmem [shape: f32[1,256], index: 2, kind: input, shape index: {}]   ;;  %s687_s3 = inlined_call_operand.vmem [shape: f32[60,128], index: 3, kind: output, shape index: {}]  }
   0x1 LB: > { %s124_s15 = sshll.u32 %s685_s1, 4  ;;  %s455_s16 = sadd.s32 4294967295, %s581_s12   ;;  %s581_s12 = sphi %s606_s12, %s14_s12   ;;  %s125_s15 = int_to_ptr.hbm [resolvable:$true] %s124_s15 }
   0x2   : > { %p457_p0 = scmp.ge.s32.totalorder %s581_s12, 1  ;;  %p113_p1 = scmp.lt.s32.totalorder %s581_s12, 3 }
   0x3   : > { %p512_p2 = scmp.eq.s32.totalorder %s455_s16, 0  ;;  %s583_s17 = smov [#allocation2]  }
   0x4   : > { %p114_p3 = pnand %p457_p0, %p113_p1  ;;  %s126_s18 = sshll.u32 %s583_s17, 4  ;;  %s127_s18 = int_to_ptr.vmem [resolvable:$true] %s126_s18 }
   0x5   : > { %s584_s19 = smov 256   ;;  %s585_s20 = smov 16  }
   0x6   : > { %p508_p4 = pneg %p114_p3  ;;  %154 = sbr.rel (%p114_p3) target bundleno = 219 (0xdb), region = 32 }
   0x8   : > { %p509_p5 = pnand %p512_p2, %p508_p4 }
   0xa   : > { %511 = dma.hbm_to_vmem [thread:$0]  (!%p509_p5), %s125_s15, 4096, %s127_s18, [#allocation3], %s584_s19, %s584_s19, %s585_s20  }
   0xb   : > { %576 = dma.done.wait (%p512_p2), [#allocation3], 4096  }
   0xc   : > { %578 = vsyncadd (%p512_p2), [#allocation3], 4294963200  ;;  %v226_v0 = vld [vmem:[#allocation2 + $0xf8] sm:$0xff]  ;;  %v224_v1 = vld [vmem:[#allocation2 + $0xe8] sm:$0xff]  ;;  %s462_s21 = sshll.u32 %s455_s16, 2 }
   0xd   : > { %262 = vmatpush.msra.mxu1 %v226_v0  ;;  %488 = vmatpush.msra.mxu3 %v226_v0  ;;  %v222_v2 = vld [vmem:[#allocation2 + $0xd8] sm:$0xff]  ;;  %v220_v3 = vld [vmem:[#allocation2 + $0xc8] sm:$0xff]  ;;  %v225_v4 = vld [vmem:[#allocation2 + $0xf0] sm:$0xff]  ;;  %p180_p6 = scmp.lt.s32.totalorder %s462_s21, 7 }
   0xe   : > { %v223_v5 = vld [vmem:[#allocation2 + $0xe0] sm:$0xff]  ;;  %v218_v6 = vld [vmem:[#allocation2 + $0xb8] sm:$0xff]  ;;  %233 = vmatpush.msra.mxu0 %v225_v4  ;;  %472 = vmatpush.msra.mxu2 %v225_v4  ;;  %v221_v7 = vld [vmem:[#allocation2 + $0xd0] sm:$0xff] }
   0xf   : > { %263 = vmatpush.msra.mxu1 %v224_v1  ;;  %489 = vmatpush.msra.mxu3 %v224_v1  ;;  %v216_v8 = vld [vmem:[#allocation2 + $0xa8] sm:$0xff]  ;;  %v219_v9 = vld [vmem:[#allocation2 + $0xc0] sm:$0xff]  ;;  %v214_v10 = vld [vmem:[#allocation2 + $0x98] sm:$0xff]  ;;  %s689_s21 = smov (!%p180_p6, %s462_s21), 7 }
  0x10   : > { %234 = vmatpush.msra.mxu0 %v223_v5  ;;  %473 = vmatpush.msra.mxu2 %v223_v5  ;;  %v217_v11 = vld [vmem:[#allocation2 + $0xb0] sm:$0xff]  ;;  %v212_v12 = vld [vmem:[#allocation2 + $0x88] sm:$0xff]  ;;  %v215_v13 = vld [vmem:[#allocation2 + $0xa0] sm:$0xff]  ;;  %s463_s22 = sshll.u32 %s689_s21, 3 }
  0x11   : > { %264 = vmatpush.msra.mxu1 %v222_v2  ;;  %490 = vmatpush.msra.mxu3 %v222_v2  ;;  %v210_v14 = vld [vmem:[#allocation2 + $0x78] sm:$0xff]  ;;  %v213_v15 = vld [vmem:[#allocation2 + $0x90] sm:$0xff]  ;;  %v208_v16 = vld [vmem:[#allocation2 + $0x68] sm:$0xff]  ;;  %s183_s25 = scalar_lea.vmem %s684_s0, %s463_s22  ;;  %s661_s30 = scalar_lea.vmem %s687_s3, %s463_s22 }
  0x12   : > { %235 = vmatpush.msra.mxu0 %v221_v7  ;;  %474 = vmatpush.msra.mxu2 %v221_v7  ;;  %v211_v17 = vld [vmem:[#allocation2 + $0x80] sm:$0xff]  ;;  %v206_v18 = vld [vmem:[#allocation2 + $0x58] sm:$0xff]  ;;  %v209_v19 = vld [vmem:[#allocation2 + $0x70] sm:$0xff] }
  0x13   : > { %265 = vmatpush.msra.mxu1 %v220_v3  ;;  %491 = vmatpush.msra.mxu3 %v220_v3  ;;  %v204_v20 = vld [vmem:[#allocation2 + $0x48] sm:$0xff]  ;;  %v207_v21 = vld [vmem:[#allocation2 + $0x60] sm:$0xff]  ;;  %v202_v22 = vld [vmem:[#allocation2 + $0x38] sm:$0xff] }
  0x14   : > { %236 = vmatpush.msra.mxu0 %v219_v9  ;;  %475 = vmatpush.msra.mxu2 %v219_v9  ;;  %v205_v23 = vld [vmem:[#allocation2 + $0x50] sm:$0xff]  ;;  %v200_v24 = vld [vmem:[#allocation2 + $0x28] sm:$0xff]  ;;  %v203_v25 = vld [vmem:[#allocation2 + $0x40] sm:$0xff] }
  0x15   : > { %266 = vmatpush.msra.mxu1 %v218_v6  ;;  %492 = vmatpush.msra.mxu3 %v218_v6  ;;  %v198_v26 = vld [vmem:[#allocation2 + $0x18] sm:$0xff]  ;;  %v201_v27 = vld [vmem:[#allocation2 + $0x30] sm:$0xff]  ;;  %v196_v28 = vld [vmem:[#allocation2 + $0x8] sm:$0xff] }
  0x16   : > { %237 = vmatpush.msra.mxu0 %v217_v11  ;;  %476 = vmatpush.msra.mxu2 %v217_v11  ;;  %v629_v29 = vld [vmem:[%s183_s25] sm:$0xff]  ;;  %v631_v30 = vld [vmem:[%s183_s25 + $0x10] sm:$0xff]  ;;  %v635_v34 = vld [vmem:[%s183_s25 + $0x8] sm:$0xff] }
  0x17   : > { %267 = vmatpush.msra.mxu1 %v216_v8  ;;  %493 = vmatpush.msra.mxu3 %v216_v8  ;;  %v199_v31 = vld [vmem:[#allocation2 + $0x20] sm:$0xff]  ;;  %v197_v32 = vld [vmem:[#allocation2 + $0x10] sm:$0xff]  ;;  %v637_v35 = vld [vmem:[%s183_s25 + $0x18] sm:$0xff] }
  0x18   : > { %238 = vmatpush.msra.mxu0 %v215_v13  ;;  %477 = vmatpush.msra.mxu2 %v215_v13  ;;  %v195_v33 = vld [vmem:[#allocation2] sm:$0xff] }
  0x19   : > { %268 = vmatpush.msra.mxu1 %v214_v10  ;;  %494 = vmatpush.msra.mxu3 %v214_v10  ;;  %v227_v36 = vld [vmem:[%s686_s2] sm:$0x3] }
  0x1a   : > { %239 = vmatpush.msra.mxu0 %v213_v15  ;;  %478 = vmatpush.msra.mxu2 %v213_v15  ;;  %v230_v37 = vperm.slane %v227_v36, 1  ;;  %v229_v52 = vperm.slane %v227_v36, 0 }
  0x1b   : > { %269 = vmatpush.msra.mxu1 %v212_v12  ;;  %495 = vmatpush.msra.mxu3 %v212_v12 }
  0x1c   : > { %240 = vmatpush.msra.mxu0 %v211_v17  ;;  %479 = vmatpush.msra.mxu2 %v211_v17 }
  0x1d   : > { %270 = vmatpush.msra.mxu1 %v210_v14  ;;  %496 = vmatpush.msra.mxu3 %v210_v14 }
  0x1e   : > { %241 = vmatpush.msra.mxu0 %v209_v19  ;;  %480 = vmatpush.msra.mxu2 %v209_v19 }
  0x1f   : > { %271 = vmatpush.msra.mxu1 %v208_v16  ;;  %497 = vmatpush.msra.mxu3 %v208_v16 }
  0x20   : > { %242 = vmatpush.msra.mxu0 %v207_v21  ;;  %481 = vmatpush.msra.mxu2 %v207_v21 }
  0x21   : > { %272 = vmatpush.msra.mxu1 %v206_v18  ;;  %498 = vmatpush.msra.mxu3 %v206_v18 }
  0x22   : > { %243 = vmatpush.msra.mxu0 %v205_v23  ;;  %482 = vmatpush.msra.mxu2 %v205_v23 }
  0x23   : > { %273 = vmatpush.msra.mxu1 %v204_v20  ;;  %499 = vmatpush.msra.mxu3 %v204_v20 }
  0x24   : > { %244 = vmatpush.msra.mxu0 %v203_v25  ;;  %483 = vmatpush.msra.mxu2 %v203_v25 }
  0x25   : > { %274 = vmatpush.msra.mxu1 %v202_v22  ;;  %500 = vmatpush.msra.mxu3 %v202_v22 }
  0x26   : > { %245 = vmatpush.msra.mxu0 %v201_v27  ;;  %484 = vmatpush.msra.mxu2 %v201_v27 }
  0x27   : > { %275 = vmatpush.msra.mxu1 %v200_v24  ;;  %501 = vmatpush.msra.mxu3 %v200_v24 }
  0x28   : > { %246 = vmatpush.msra.mxu0 %v199_v31  ;;  %485 = vmatpush.msra.mxu2 %v199_v31 }
  0x29   : > { %276 = vmatpush.msra.mxu1 %v198_v26  ;;  %502 = vmatpush.msra.mxu3 %v198_v26 }
  0x2a   : > { %247 = vmatpush.msra.mxu0 %v197_v32  ;;  %486 = vmatpush.msra.mxu2 %v197_v32 }
  0x2b   : > { %277 = vmatpush.msra.mxu1 %v196_v28  ;;  %503 = vmatpush.msra.mxu3 %v196_v28 }
  0x2c   : > { %278 = vmatmul.f32.vlgmr.msra.gmra.mxu1 %v629_v29  ;;  %284 = vmatmul.f32.vlgmr.msra.gmra.mxu3 %v631_v30 }
  0x2d   : > { %248 = vmatpush.msra.mxu0 %v195_v33  ;;  %487 = vmatpush.msra.mxu2 %v195_v33 }
  0x2e   : > { %249 = vmatmul.f32.vlgmr.msra.gmra.mxu0 %v629_v29  ;;  %255 = vmatmul.f32.vlgmr.msra.gmra.mxu2 %v631_v30 }
  0x34   : > { %281 = vmatmul.f32.gmra.mxu1 %v635_v34  ;;  %287 = vmatmul.f32.gmra.mxu3 %v637_v35 }
  0x36   : > { %252 = vmatmul.f32.gmra.mxu0 %v635_v34  ;;  %258 = vmatmul.f32.gmra.mxu2 %v637_v35 }
  0xa9   : > { %v279_v38 = vpop.f32.mrf.mxu1 }
  0xaa   : > { %v280_v39 = vadd.f32 %v279_v38, %v230_v37 }
  0xab   : > { %v250_v49 = vpop.f32.mrf.mxu0 }
  0xac   : > { %v466_v40 = vmul.f32 -1.442695, %v280_v39  ;;  %v251_v57 = vadd.f32 %v250_v49, %v229_v52 }
  0xae   : > { %525 = vpow2.f32 %v466_v40  ;;  %v291_v63 = vmax.f32 %v251_v57, 0.0 }
  0xaf   : > { %v285_v41 = vpop.f32.mrf.mxu3 }
  0xb0   : > { %v286_v42 = vadd.f32 %v285_v41, %v230_v37  ;;  %v371_v11 = vsub.f32 %v291_v63, %v629_v29 }
  0xb1   : > { %v282_v43 = vpop.f32.mrf.mxu1  ;;  %v256_v58 = vpop.f32.mrf.mxu2 }
  0xb2   : > { %v468_v44 = vmul.f32 -1.442695, %v286_v42  ;;  %v283_v45 = vadd.f32 %v282_v43, %v230_v37  ;;  %v257_v2 = vadd.f32 %v256_v58, %v229_v52 }
  0xb3   : > { %v253_v0 = vpop.f32.mrf.mxu0 }
  0xb4   : > { %v526_v46 = vpop.eup %525  ;;  %527 = vpow2.f32 %v468_v44  ;;  %v467_v47 = vmul.f32 -1.442695, %v283_v45  ;;  %v254_v8 = vadd.f32 %v253_v0, %v229_v52  ;;  %v293_v14 = vmax.f32 %v257_v2, 0.0 }
  0xb5   : > { %v307_v48 = vadd.f32 1.0, %v526_v46 }
  0xb6   : > { %529 = vpow2.f32 %v467_v47  ;;  %v292_v22 = vmax.f32 %v254_v8, 0.0  ;;  %v373_v38 = vsub.f32 %v293_v14, %v631_v30 }
  0xb7   : > { %531 = vrcp.f32 %v307_v48  ;;  %v288_v50 = vpop.f32.mrf.mxu3  ;;  %v322_v1 = vand.u32 2147483648, %v307_v48  ;;  %v320_v5 = vand.u32 2147483647, %v307_v48  ;;  %vm316_vm1 = vweird.f32 %v307_v48 }
  0xb8   : > { %v289_v51 = vadd.f32 %v288_v50, %v230_v37  ;;  %v372_v39 = vsub.f32 %v292_v22, %v635_v34 }
  0xb9   : > { %v323_v13 = vor.u32 1.1754944e-38, %v322_v1  ;;  %vm321_vm3 = vcmp.eq.f32.partialorder %v320_v5, 8.507059e+37  ;;  %v259_v18 = vpop.f32.mrf.mxu2 }
  0xba   : > { %v528_v53 = vpop.eup %527  ;;  %v469_v54 = vmul.f32 -1.442695, %v289_v51  ;;  %v260_v28 = vadd.f32 %v259_v18, %v229_v52 }
  0xbb   : > { %v309_v55 = vadd.f32 1.0, %v528_v53 }
  0xbc   : > { %v530_v56 = vpop.eup %529  ;;  %533 = vpow2.f32 %v469_v54  ;;  %v294_v46 = vmax.f32 %v260_v28, 0.0 }
  0xbd   : > { %v532_v59 = vpop.eup %531  ;;  %535 = vrcp.f32 %v309_v55  ;;  %v648_v60 = vadd.f32 1.0, %v530_v56  ;;  %v350_v20 = vand.u32 2147483647, %v309_v55  ;;  %v352_v21 = vand.u32 2147483648, %v309_v55 }
  0xbe   : > { %v312_v61 = vmul.f32 %v532_v59, %v307_v48  ;;  %vm317_vm0 = vweird.f32 %v532_v59  ;;  %vm346_vm5 = vweird.f32 %v309_v55 }
  0xbf   : > { %537 = vrcp.f32 %v648_v60  ;;  %vm318_vm2 = vmor %vm316_vm1, %vm317_vm0  ;;  %v335_v26 = vand.u32 2147483647, %v648_v60  ;;  %v337_v27 = vand.u32 2147483648, %v648_v60  ;;  %vm351_vm8 = vcmp.eq.f32.partialorder %v350_v20, 8.507059e+37 }
  0xc0   : > { %v313_v62 = vsub.f32 1.0, %v312_v61  ;;  %v353_v37 = vor.u32 1.1754944e-38, %v352_v21  ;;  %vm331_vm9 = vweird.f32 %v648_v60 }
  0xc1   : > { %vm336_vm11 = vcmp.eq.f32.partialorder %v335_v26, 8.507059e+37 }
  0xc2   : > { %v534_v3 = vpop.eup %533  ;;  %v314_v4 = vmul.f32 %v532_v59, %v313_v62 }
  0xc3   : > { %v536_v6 = vpop.eup %535  ;;  %v651_v7 = vadd.f32 1.0, %v534_v3 }
  0xc4   : > { %v342_v9 = vmul.f32 %v536_v6, %v309_v55  ;;  %v315_v10 = vadd.f32 %v532_v59, %v314_v4  ;;  %vm347_vm4 = vweird.f32 %v536_v6  ;;  %v374_v55 = vsub.f32 %v294_v46, %v637_v35 }
  0xc5   : > { %v538_v12 = vpop.eup %537  ;;  %539 = vrcp.f32 %v651_v7  ;;  %vm348_vm7 = vmor %vm346_vm5, %vm347_vm4  ;;  %v367_v49 = vand.u32 2147483648, %v651_v7  ;;  %v365_v52 = vand.u32 2147483647, %v651_v7  ;;  %vm361_vm13 = vweird.f32 %v651_v7 }
  0xc6   : > { %v343_v15 = vsub.f32 1.0, %v342_v9  ;;  %v327_v16 = vmul.f32 %v538_v12, %v648_v60  ;;  %v319_v17 = vsel %vm318_vm2, %v532_v59, %v315_v10  ;;  %vm332_vm6 = vweird.f32 %v538_v12 }
  0xc7   : > { %v324_v19 = vsel %vm321_vm3, %v323_v13, %v319_v17  ;;  %vm333_vm10 = vmor %vm331_vm9, %vm332_vm6  ;;  %v368_v57 = vor.u32 1.1754944e-38, %v367_v49  ;;  %vm366_vm15 = vcmp.eq.f32.partialorder %v365_v52, 8.507059e+37 }
  0xc8   : > { %v328_v23 = vsub.f32 1.0, %v327_v16  ;;  %v375_v24 = vmul.f32 %v371_v11, %v324_v19  ;;  %v344_v25 = vmul.f32 %v536_v6, %v343_v15 }
  0xca   : > { %v379_v31 = vadd.f32 %v375_v24, %v629_v29  ;;  %v345_v32 = vadd.f32 %v536_v6, %v344_v25  ;;  %v329_v33 = vmul.f32 %v538_v12, %v328_v23  ;;  %v338_v29 = vor.u32 1.1754944e-38, %v337_v27 }
  0xcb   : > { %v540_v36 = vpop.eup %539 }
  0xcc   : > { %v357_v40 = vmul.f32 %v540_v36, %v651_v7  ;;  %383 = vst [vmem:[%s661_s30] sm:$0xff] %v379_v31  ;;  %v349_v41 = vsel %vm348_vm7, %v536_v6, %v345_v32  ;;  %v330_v42 = vadd.f32 %v538_v12, %v329_v33  ;;  %vm362_vm12 = vweird.f32 %v540_v36 }
  0xcd   : > { %v354_v43 = vsel %vm351_vm8, %v353_v37, %v349_v41  ;;  %vm363_vm14 = vmor %vm361_vm13, %vm362_vm12 }
  0xce   : > { %v358_v44 = vsub.f32 1.0, %v357_v40  ;;  %v334_v45 = vsel %vm333_vm10, %v538_v12, %v330_v42  ;;  %v377_v47 = vmul.f32 %v373_v38, %v354_v43 }
  0xcf   : > { %v339_v48 = vsel %vm336_vm11, %v338_v29, %v334_v45 }
  0xd0   : > { %v376_v50 = vmul.f32 %v372_v39, %v339_v48  ;;  %v359_v51 = vmul.f32 %v540_v36, %v358_v44  ;;  %v381_v56 = vadd.f32 %v377_v47, %v631_v30 }
  0xd2   : > { %v380_v53 = vadd.f32 %v376_v50, %v635_v34  ;;  %v360_v54 = vadd.f32 %v540_v36, %v359_v51  ;;  %385 = vst [vmem:[%s661_s30 + $0x10] sm:$0xff] %v381_v56 }
  0xd4   : > { %384 = vst [vmem:[%s661_s30 + $0x8] sm:$0xff] %v380_v53  ;;  %v364_v58 = vsel %vm363_vm14, %v540_v36, %v360_v54 }
  0xd5   : > { %v369_v59 = vsel %vm366_vm15, %v368_v57, %v364_v58 }
  0xd6   : > { %v378_v60 = vmul.f32 %v374_v55, %v369_v59 }
  0xd8   : > { %v382_v61 = vadd.f32 %v378_v60, %v637_v35 }
  0xda   : > { %386 = vst [vmem:[%s661_s30 + $0x18] sm:$0xff] %v382_v61 }
  0xdb PF: > { %s14_s12 = sadd.s32 1, %s581_s12  }
  0xdc   : > { %p11_p7 = scmp.ge.s32.totalorder %s14_s12, 4  }
  0xde   :  { %13 = sbr.rel (!%p11_p7) target bundleno = 1 (0x1), region = 67 }
  0xe3   :  { %409 = vsyncpa [#allocation3], 1 }
  0xe4   :  { %411 = vsyncpa [#allocation3 + $0x1], 1 }

</bundles_post_ra>
